<compile_context>
chip_gen: v6e
topology: v6e:2x2x1
jax: 0.10.0
libtpu: 0.0.40
codegen_flags: <defaults>
</compile_context>

<pallas_src>
import functools

import jax
import jax.numpy as jnp
from jax.experimental import pallas as pl
from jax.experimental.pallas import tpu as pltpu


# Use XLU rolls instead of k shifted slices at/above this kernel_size.
_ROLL_MIN_KERNEL_SIZE = 11


def _decomp_kernel(x_ref, front_ref, end_ref, res_ref, mean_ref, *, kernel_size):
    pad = (kernel_size - 1) // 2
    x = x_ref[0]                           # (Lt, ct), input dtype
    lt = x.shape[0]
    front = front_ref[0, 0]                # (pad, ct) -- left halo / replicated edge
    end = end_ref[0, 0]                    # (pad, ct) -- right halo / replicated edge

    # Padded window for this tile.  Halo rows already hold the correct
    # neighbour-tile / edge-replicated values, so no tile-index branching.
    xp = jnp.concatenate([front, x, end], axis=0).astype(jnp.float32)   # (Lt+2p, ct)
    lp = lt + 2 * pad

    if kernel_size >= _ROLL_MIN_KERNEL_SIZE:
        # Accumulate with sublane rotations (XLU) instead of k unaligned
        # slices.  The shift set {0, +-1, ..., +-pad} is symmetric, so the sum
        # is independent of the roll-direction convention; rows that pick up
        # wrapped-around values lie outside [pad, pad+Lt) and are discarded.
        acc = xp
        for j in range(1, pad + 1):
            acc = acc + pltpu.roll(xp, shift=j, axis=0)
            acc = acc + pltpu.roll(xp, shift=lp - j, axis=0)   # == shift -j
        acc = acc[pad:pad + lt, :]
        # TODO(synk): for very large kernel_size, a banded-matrix matmul on
        # the otherwise-idle MXU would make the averaging O(1) in k.
    else:
        # Small k: the unrolled shifted-window sum sits in the slack of a
        # memory-bound kernel.
        acc = xp[0:lt, :]
        for i in range(1, kernel_size):
            acc = acc + xp[i:i + lt, :]

    mean = (acc * (1.0 / kernel_size)).astype(mean_ref.dtype)
    mean_ref[0] = mean
    # Subtract in the input dtype so `res` matches the PyTorch
    # `res = x - moving_mean` exactly, including for bf16 inputs.
    res_ref[0] = (x - mean).astype(res_ref.dtype)


def _vmem_capacity_bytes():
    try:
        info = pltpu.get_tpu_info()
        return int(getattr(info, "vmem_capacity_bytes", 64 * 1024 * 1024))
    except Exception:
        return 64 * 1024 * 1024   # conservative default: v7x per-TensorCore VMEM


def _choose_tiles(L, C, itemsize, step_budget_bytes, max_seq_tile=None):
    """Pick (seq_tile, chan_tile) keeping the per-step VMEM footprint bounded."""
    # Channel tile: lane-dense multiples of 128 (prefer large / full-C blocks
    # for contiguous DMA rows); otherwise the full channel dim.
    # TODO(synk): for small / non-128-multiple C (e.g. 7, 21, 321 channels),
    # pad C to a multiple of 128 (or put L on the lane axis) to avoid masked
    # vst on every output store.
    if C % 128 == 0:
        ct = 128
        while C % (ct * 2) == 0 and ct * 2 <= 2048:
            ct *= 2
    else:
        ct = C

    # Rough per-sequence-row footprint: 3 pipelined arrays (x, res, mean),
    # double-buffered, plus ~4 f32-sized in-kernel temporaries.
    def cap_rows(ct_):
        per_row = ct_ * (6 * itemsize + 16)
        return max(8, step_budget_bytes // per_row)

    # If a huge channel tile squeezes the sequence tile too much, shrink it.
    while ct > 128 and ct % 256 == 0 and cap_rows(ct) < min(L, 512):
        ct //= 2

    cap = cap_rows(ct)
    if max_seq_tile is not None:
        cap = min(cap, max_seq_tile)
    if L <= cap:
        return L, ct

    # Largest multiple-of-8 divisor of L that fits the budget.
    d = (cap // 8) * 8
    while d >= 8:
        if L % d == 0:
            return d, ct
        d -= 8
    # TODO(synk): masked handling of a ragged final sequence tile for awkward
    # L; fall back to an untiled sequence for now.
    return L, ct


def series_decomp(x, kernel_size, *, max_seq_tile=None):
    """x: (B, L, C). Returns (res, moving_mean), both (B, L, C).

    Only odd kernel_size is supported (the PyTorch module's `x - moving_mean`
    would shape-mismatch for even kernel_size)."""
    assert kernel_size % 2 == 1, "series_decomp requires odd kernel_size"
    B, L, C = x.shape
    pad = (kernel_size - 1) // 2
    if pad == 0:                       # kernel_size == 1: moving mean is identity
        return jnp.zeros_like(x), x

    itemsize = jnp.dtype(x.dtype).itemsize
    vmem_cap = _vmem_capacity_bytes()
    # Leave headroom below physical VMEM (v5e/v6e: 128 MiB -> 96; v7x: 64 -> 48).
    vmem_limit = int(min(100 * 1024 * 1024,
                         max(32 * 1024 * 1024, (vmem_cap * 3) // 4)))
    seq_tile, chan_tile = _choose_tiles(
        L, C, itemsize, step_budget_bytes=vmem_limit // 2, max_seq_tile=max_seq_tile)
    assert L % seq_tile == 0 and C % chan_tile == 0
    n_lt = L // seq_tile
    n_ct = C // chan_tile

    # Halo side-inputs: `pad` rows of left/right context per sequence tile.
    # jnp.clip on the gather index reproduces the module's edge replication
    # (including tiles at the sequence boundary).  Size (B, n_lt, pad, C) is a
    # ~pad/seq_tile fraction of x -- negligible extra HBM traffic.
    starts = jnp.arange(n_lt, dtype=jnp.int32) * seq_tile
    r = jnp.arange(pad, dtype=jnp.int32)
    front_idx = jnp.clip(starts[:, None] - pad + r[None, :], 0, L - 1)
    end_idx = jnp.clip(starts[:, None] + seq_tile + r[None, :], 0, L - 1)
    front_halo = x[:, front_idx, :]        # (B, n_lt, pad, C)
    end_halo = x[:, end_idx, :]            # (B, n_lt, pad, C)

    kernel = functools.partial(_decomp_kernel, kernel_size=kernel_size)

    tile_spec = pl.BlockSpec((1, seq_tile, chan_tile), lambda b, c, l: (b, l, c))
    halo_spec = pl.BlockSpec((1, 1, pad, chan_tile), lambda b, c, l: (b, l, 0, c))

    res, mean = pl.pallas_call(
        kernel,
        out_shape=(
            jax.ShapeDtypeStruct((B, L, C), x.dtype),
            jax.ShapeDtypeStruct((B, L, C), x.dtype),
        ),
        grid_spec=pltpu.PrefetchScalarGridSpec(
            num_scalar_prefetch=0,
            grid=(B, n_ct, n_lt),
            in_specs=[tile_spec, halo_spec, halo_spec],
            out_specs=[tile_spec, tile_spec],
        ),
        compiler_params=pltpu.CompilerParams(
            dimension_semantics=("parallel", "parallel", "parallel"),
            vmem_limit_bytes=vmem_limit,
        ),
    )(x, front_halo, end_halo)
    return res, mean


def series_decomp_ref(x, kernel_size):
    """Pure-JAX reference matching the PyTorch module (odd kernel_size)."""
    pad = (kernel_size - 1) // 2
    if pad == 0:
        return jnp.zeros_like(x), x
    front = jnp.repeat(x[:, 0:1, :], pad, axis=1)
    end = jnp.repeat(x[:, -1:, :], pad, axis=1)
    xp = jnp.concatenate([front, x, end], axis=1)
    L = x.shape[1]
    windows = jnp.stack([xp[:, i:i + L, :] for i in range(kernel_size)], axis=0)
    mean = jnp.mean(windows.astype(jnp.float32), axis=0).astype(x.dtype)
    return x - mean, mean


if __name__ == "__main__":
    def _check(B, L, C, kernel_size, **kw):
        key = jax.random.PRNGKey(0)
        x = jax.random.normal(key, (B, L, C), dtype=jnp.float32)
        res, mean = series_decomp(x, kernel_size, **kw)
        res = jax.block_until_ready(res)
        mean = jax.block_until_ready(mean)
        res_ref, mean_ref = series_decomp_ref(x, kernel_size)
        assert res.shape == (B, L, C) and mean.shape == (B, L, C)
        assert jnp.allclose(mean, mean_ref, atol=1e-5, rtol=1e-5)
        assert jnp.allclose(res, res_ref, atol=1e-5, rtol=1e-5)
        assert jnp.allclose(res + mean, x, atol=1e-5, rtol=1e-5)

    # Small config: single sequence tile, shifted-slice averaging path.
    _check(2, 8, 32, 5)
    # Longer sequence: exercises sequence tiling with gathered halos and the
    # pltpu.roll accumulation path (kernel_size = 25, forced 128-row tiles).
    _check(2, 512, 128, 25, max_seq_tile=128)

    print("KERNEL_OK")
</pallas_src>

<mosaic_0001>
module attributes {stable_mosaic.version = 11 : i64} {
  func.func @_decomp_kernel(%arg0: i32, %arg1: i32, %arg2: i32, %arg3: memref<1x8x32xf32, #tpu.memory_space<vmem>>, %arg4: memref<1x1x2x32xf32, #tpu.memory_space<vmem>>, %arg5: memref<1x1x2x32xf32, #tpu.memory_space<vmem>>, %arg6: memref<1x8x32xf32, #tpu.memory_space<vmem>>, %arg7: memref<1x8x32xf32, #tpu.memory_space<vmem>>) attributes {dimension_semantics = [#tpu.dimension_semantics<parallel>, #tpu.dimension_semantics<parallel>, #tpu.dimension_semantics<parallel>], iteration_bounds = array<i64: 2, 1, 1>, scalar_prefetch = 0 : i64, scratch_operands = 0 : i64, tpu.core_type = #tpu.core_type<tc>, window_params = [{transform_indices = @transform_0, window_bounds = array<i64: 1, 8, 32>}, {transform_indices = @transform_1, window_bounds = array<i64: 1, 1, 2, 32>}, {transform_indices = @transform_2, window_bounds = array<i64: 1, 1, 2, 32>}, {transform_indices = @transform_3, window_bounds = array<i64: 1, 8, 32>}, {transform_indices = @transform_4, window_bounds = array<i64: 1, 8, 32>}]} {
    %c0 = arith.constant 0 : index
    %c0_0 = arith.constant 0 : index
    %c0_1 = arith.constant 0 : index
    %0 = vector.load %arg3[%c0, %c0_0, %c0_1] : memref<1x8x32xf32, #tpu.memory_space<vmem>>, vector<1x8x32xf32>
    %1 = vector.shape_cast %0 : vector<1x8x32xf32> to vector<8x32xf32>
    %c0_2 = arith.constant 0 : index
    %c0_3 = arith.constant 0 : index
    %c0_4 = arith.constant 0 : index
    %c0_5 = arith.constant 0 : index
    %2 = vector.load %arg4[%c0_2, %c0_3, %c0_4, %c0_5] : memref<1x1x2x32xf32, #tpu.memory_space<vmem>>, vector<1x1x2x32xf32>
    %3 = vector.shape_cast %2 : vector<1x1x2x32xf32> to vector<2x32xf32>
    %c0_6 = arith.constant 0 : index
    %c0_7 = arith.constant 0 : index
    %c0_8 = arith.constant 0 : index
    %c0_9 = arith.constant 0 : index
    %4 = vector.load %arg5[%c0_6, %c0_7, %c0_8, %c0_9] : memref<1x1x2x32xf32, #tpu.memory_space<vmem>>, vector<1x1x2x32xf32>
    %5 = vector.shape_cast %4 : vector<1x1x2x32xf32> to vector<2x32xf32>
    %6 = tpu.concatenate %3, %1, %5 in 0 : vector<2x32xf32>, vector<8x32xf32>, vector<2x32xf32> -> vector<12x32xf32>
    %7 = vector.extract_strided_slice %6 {offsets = [0, 0], sizes = [8, 32], strides = [1, 1]} : vector<12x32xf32> to vector<8x32xf32>
    %8 = vector.extract_strided_slice %6 {offsets = [1, 0], sizes = [8, 32], strides = [1, 1]} : vector<12x32xf32> to vector<8x32xf32>
    %9 = arith.addf %7, %8 : vector<8x32xf32>
    %10 = vector.extract_strided_slice %6 {offsets = [2, 0], sizes = [8, 32], strides = [1, 1]} : vector<12x32xf32> to vector<8x32xf32>
    %11 = arith.addf %9, %10 : vector<8x32xf32>
    %12 = vector.extract_strided_slice %6 {offsets = [3, 0], sizes = [8, 32], strides = [1, 1]} : vector<12x32xf32> to vector<8x32xf32>
    %13 = arith.addf %11, %12 : vector<8x32xf32>
    %14 = vector.extract_strided_slice %6 {offsets = [4, 0], sizes = [8, 32], strides = [1, 1]} : vector<12x32xf32> to vector<8x32xf32>
    %15 = arith.addf %13, %14 : vector<8x32xf32>
    %cst = arith.constant 2.000000e-01 : f32
    %16 = vector.broadcast %cst : f32 to vector<8x32xf32>
    %17 = arith.mulf %15, %16 : vector<8x32xf32>
    %c0_10 = arith.constant 0 : index
    %c0_11 = arith.constant 0 : index
    %c0_12 = arith.constant 0 : index
    %18 = vector.load %arg7[%c0_10, %c0_11, %c0_12] : memref<1x8x32xf32, #tpu.memory_space<vmem>>, vector<1x8x32xf32>
    %19 = vector.shape_cast %18 : vector<1x8x32xf32> to vector<8x32xf32>
    %20 = vector.shape_cast %17 : vector<8x32xf32> to vector<1x8x32xf32>
    tpu.vector_store %arg7[%c0_10, %c0_11, %c0_12], %20 {strides = array<i32>} : memref<1x8x32xf32, #tpu.memory_space<vmem>>, vector<1x8x32xf32>,
    %21 = arith.subf %1, %17 : vector<8x32xf32>
    %c0_13 = arith.constant 0 : index
    %c0_14 = arith.constant 0 : index
    %c0_15 = arith.constant 0 : index
    %22 = vector.load %arg6[%c0_13, %c0_14, %c0_15] : memref<1x8x32xf32, #tpu.memory_space<vmem>>, vector<1x8x32xf32>
    %23 = vector.shape_cast %22 : vector<1x8x32xf32> to vector<8x32xf32>
    %24 = vector.shape_cast %21 : vector<8x32xf32> to vector<1x8x32xf32>
    tpu.vector_store %arg6[%c0_13, %c0_14, %c0_15], %24 {strides = array<i32>} : memref<1x8x32xf32, #tpu.memory_space<vmem>>, vector<1x8x32xf32>,
    return
  }
  func.func @transform_0(%arg0: i32, %arg1: i32, %arg2: i32) -> (i32, i32, i32) {
    %c0_i32 = arith.constant 0 : i32
    return %arg0, %arg2, %arg1 : i32, i32, i32
  }
  func.func @transform_1(%arg0: i32, %arg1: i32, %arg2: i32) -> (i32, i32, i32, i32) {
    %c0_i32 = arith.constant 0 : i32
    %c0_i32_0 = arith.constant 0 : i32
    return %arg0, %arg2, %c0_i32, %arg1 : i32, i32, i32, i32
  }
  func.func @transform_2(%arg0: i32, %arg1: i32, %arg2: i32) -> (i32, i32, i32, i32) {
    %c0_i32 = arith.constant 0 : i32
    %c0_i32_0 = arith.constant 0 : i32
    return %arg0, %arg2, %c0_i32, %arg1 : i32, i32, i32, i32
  }
  func.func @transform_3(%arg0: i32, %arg1: i32, %arg2: i32) -> (i32, i32, i32) {
    %c0_i32 = arith.constant 0 : i32
    return %arg0, %arg2, %arg1 : i32, i32, i32
  }
  func.func @transform_4(%arg0: i32, %arg1: i32, %arg2: i32) -> (i32, i32, i32) {
    %c0_i32 = arith.constant 0 : i32
    return %arg0, %arg2, %arg1 : i32, i32, i32
  }
}

</mosaic_0001>

<bundles_post_ra>
// kernel: tpu_custom_call.1
= control target key start
LH: loop header
LB: loop body
LE: loop exit
PB: predicated region body
PF: predicated region fallthrough
CT: control target
= control target key end

     0   :  { %s1158_s0 = inlined_call_operand.hbm [shape: f32[2,8,32], index: 0, kind: input, shape index: {}]   ;;  %s1159_s1 = inlined_call_operand.hbm [shape: f32[2,1,2,32], index: 1, kind: input, shape index: {}]   ;;  %s1160_s2 = inlined_call_operand.hbm [shape: f32[2,1,2,32], index: 2, kind: input, shape index: {}]   ;;  %s1161_s3 = inlined_call_operand.hbm [shape: f32[2,8,32], index: 3, kind: output, shape index: {0}]   ;;  %s1162_s4 = inlined_call_operand.hbm [shape: f32[2,8,32], index: 4, kind: output, shape index: {1}]  }
   0x1   :  { %1165 = sst [smem:[#allocation18_spill]] %s1159_s1 }
   0x2   :  { %1166 = sst [smem:[#allocation19_spill]] %s1160_s2 }
   0x3   :  { %10 = vsyncpa [#allocation3], 0 }
   0x4   :  { %12 = vsyncpa [#allocation3 + $0x1], 0 }
   0x5   :  { %13 = vsyncpa [#allocation6], 0 }
   0x6   :  { %15 = vsyncpa [#allocation6 + $0x1], 0 }
   0x7   :  { %16 = vsyncpa [#allocation4], 0 }
   0x8   :  { %18 = vsyncpa [#allocation4 + $0x1], 0 }
   0x9   :  { %19 = vsyncpa [#allocation10], 0 }
   0xa   :  { %21 = vsyncpa [#allocation10 + $0x1], 0  ;;  %s914_s15 = smov 0   ;;  %s916_s16 = smov 0  }
   0xb   :  { %s918_s17 = smov 0   ;;  %s920_s18 = smov 0  }
   0xc   :  { %s922_s19 = smov 0   ;;  %s924_s20 = smov 0  }
   0xd LB: > { %1167 = sst [smem:[#allocation15_spill]] %s878_s19  ;;  %s945_s21 = sadd.s32 4294967295, %s882_s20   ;;  %s882_s20 = sphi %s924_s20, %s27_s20   ;;  %s878_s19 = sphi %s922_s19, %s1181_s19   ;;  %s874_s18 = sphi %s920_s18, %s1180_s18   ;;  %s870_s17 = sphi %s918_s17, %s1184_s17   ;;  %s866_s16 = sphi %s916_s16, %s1183_s16   ;;  %s862_s15 = sphi %s914_s15, %s1182_s15  }
   0xe   : > { %s586_s22 = sadd.s32 4294967294, %s882_s20   ;;  %s46_s23 = sadd.s32 1, %s878_s19 }
   0xf   : > { %s57_s24 = sadd.s32 1, %s870_s17  ;;  %p48_p0 = scmp.ge.s32.totalorder %s46_s23, 2 }
  0x10   : > { %p64_p1 = scmp.ne.s32.totalorder %s870_s17, %s866_s16  ;;  %p65_p2 = scmp.eq.s32.totalorder %s882_s20, 0 }
  0x11   : > { %p70_p3 = scmp.ne.s32.totalorder %s866_s16, %s862_s15  ;;  %s1186_s23 = smov (%p48_p0, %s46_s23), 0 }
  0x12   : > { %1168 = sst [smem:[#allocation16_spill]] %s1186_s23  ;;  %p957_p4 = por %p65_p2, %p64_p1 }
  0x13   : > { %p71_p5 = scmp.eq.s32.totalorder %s945_s21, 0  ;;  %s50_s26 = ssub.s32 %s878_s19, %s1186_s23 }
  0x14   : > { %p158_p6 = scmp.eq.s32.totalorder %s945_s21, 1  ;;  %p55_p7 = scmp.eq.s32.totalorder %s50_s26, 0 }
  0x15   : > { %p965_p8 = por %p71_p5, %p70_p3  ;;  %p164_p10 = scmp.eq.s32.totalorder %s586_s22, 1 }
  0x16   : > { %p969_p9 = por %p158_p6, %p64_p1  ;;  %p634_p13 = scmp.lt.s32.totalorder %s882_s20, 2 }
  0x17   : > { %s974_s29 = scalar_select %p55_p7, %s870_s17, %s57_s24  }
  0x18   : > { %p976_p11 = por %p164_p10, %p70_p3  ;;  %s983_s5 = sand.u32 1, %s870_s17  }
  0x19   : > { %1172 = sst [smem:[#allocation17_spill]] %s974_s29  ;;  %s234_s6 = sand.u32 1, %s882_s20  }
  0x1a   : > { %s591_s7 = sshll.u32 %s983_s5, 1  ;;  %p989_p0 = pnand %p634_p13, %p957_p4 }
  0x1b   : > { %s592_s9 = sshll.u32 %s878_s19, 5  ;;  %s1175_s1 = sld [smem:[#allocation18_spill]] }
  0x1c   : > { %s238_s13 = scalar_lea.vmem [#allocation5], %s591_s7  ;;  %s1176_s2 = sld [smem:[#allocation19_spill]] }
  0x1d   : > { %s247_s14 = sshll.u32 %s238_s13, 4  ;;  %s1004_s25 = scalar_lea.sflag [#allocation6], %s234_s6  ;;  %s248_s14 = int_to_ptr.vmem [resolvable:$true] %s247_s14 }
  0x1e   : > { %p686_p1 = pneg %p989_p0  ;;  %s697_s23 = scalar_lea.vmem %s248_s14, 32 }
  0x1f   : > { %p698_p2 = scmp.ne.s32.totalorder %s248_s14, %s697_s23  ;;  %s884_s10 = smov [#allocation5]  }
  0x20   : > { %s702_s11 = sshll.u32 %s884_s10, 4  ;;  %s703_s11 = int_to_ptr.vmem [resolvable:$false] %s702_s11 }
  0x21   : > { %s245_s12 = scalar_lea.hbm %s1175_s1, %s592_s9  ;;  %p700_p3 = pnand %p698_p2, %p686_p1 }
  0x22   : > { %s1002_s26 = scalar_lea.hbm %s1176_s2, %s592_s9  ;;  %s704_s13 = scalar_lea.vmem %s703_s11, 64 }
  0x23   : > { %p701_p4 = pneg %p700_p3  ;;  %p705_p5 = scmp.lt.s32.totalorder %s248_s14, %s703_s11 }
  0x24   : > { %p706_p6 = scmp.lt.s32.totalorder %s704_s13, %s697_s23 }
  0x26   : > { %p707_p7 = por %p706_p6, %p705_p5 }
  0x28   : > { %p708_p10 = pnand %p707_p7, %p701_p4 }
  0x2a   : > { %711 = shalt.err (!%p708_p10)
}
  0x2b   : > { %623 = dma.hbm_to_vmem [thread:$0]  (!%p989_p0), %s245_s12, 32, %s248_s14, %s1004_s25  }
  0x2c   : > { %p595_p13 = scmp.ge.s32.totalorder %s882_s20, 1  ;;  %p272_p2 = scmp.lt.s32.totalorder %s882_s20, 3 }
  0x2d   : > { %s589_s23 = sshll.u32 %s983_s5, 3  ;;  %s590_s9 = sshll.u32 %s878_s19, 7 }
  0x2e   : > { %p1016_p3 = pnand %p595_p13, %p272_p2  ;;  %s225_s10 = scalar_lea.hbm %s1158_s0, %s590_s9 }
  0x2f   : > { %s218_s11 = scalar_lea.vmem [#allocation2], %s589_s23  ;;  %s258_s1 = scalar_lea.vmem [#allocation7], %s591_s7 }
  0x30   : > { %s227_s13 = sshll.u32 %s218_s11, 4  ;;  %s267_s2 = sshll.u32 %s258_s1, 4  ;;  %s228_s13 = int_to_ptr.vmem [resolvable:$true] %s227_s13  ;;  %s1027_s2 = int_to_ptr.vmem [resolvable:$true] %s267_s2 }
  0x31   : > { %s215_s12 = scalar_lea.sflag [#allocation3], %s983_s5  ;;  %s725_s14 = scalar_lea.vmem %s228_s13, 128 }
  0x32   : > { %p726_p4 = scmp.ne.s32.totalorder %s228_s13, %s725_s14  ;;  %s885_s19 = smov [#allocation2]  }
  0x33   : > { %s730_s29 = sshll.u32 %s885_s19, 4  ;;  %s731_s29 = int_to_ptr.vmem [resolvable:$false] %s730_s29 }
  0x34   : > { %p728_p5 = pnand %p726_p4, %p686_p1  ;;  %s732_s22 = scalar_lea.vmem %s731_s29, 256 }
  0x35   : > { %p733_p7 = scmp.lt.s32.totalorder %s228_s13, %s731_s29  ;;  %p734_p10 = scmp.lt.s32.totalorder %s732_s22, %s725_s14 }
  0x36   : > { %p729_p6 = pneg %p728_p5 }
  0x37   : > { %p735_p13 = por %p734_p10, %p733_p7 }
  0x39   : > { %p736_p2 = pnand %p735_p13, %p729_p6 }
  0x3b   : > { %739 = shalt.err (!%p736_p2)
}
  0x3c   : > { %620 = dma.hbm_to_vmem [thread:$0]  (!%p989_p0), %s225_s10, 128, %s228_s13, %s215_s12  }
  0x3d   : > { %s753_s1 = scalar_lea.vmem %s1027_s2, 32  ;;  %s886_s19 = smov [#allocation7]  }
  0x3e   : > { %p754_p12 = scmp.ne.s32.totalorder %s1027_s2, %s753_s1  ;;  %s758_s5 = sshll.u32 %s886_s19, 4  ;;  %s759_s5 = int_to_ptr.vmem [resolvable:$false] %s758_s5 }
  0x3f   : > { %s760_s29 = scalar_lea.vmem %s759_s5, 64  ;;  %p761_p7 = scmp.lt.s32.totalorder %s1027_s2, %s759_s5 }
  0x40   : > { %p756_p4 = pnand %p754_p12, %p686_p1  ;;  %p762_p6 = scmp.lt.s32.totalorder %s760_s29, %s753_s1 }
  0x42   : > { %p757_p5 = pneg %p756_p4  ;;  %p763_p10 = por %p762_p6, %p761_p7 }
  0x44   : > { %p764_p13 = pnand %p763_p10, %p757_p5 }
  0x46   : > { %767 = shalt.err (!%p764_p13)
}
  0x47   : > { %626 = dma.hbm_to_vmem [thread:$0]  (!%p989_p0), %s1002_s26, 32, %s1027_s2, %s1004_s25  }
  0x48   : > { %276 = sbr.rel (%p1016_p3) target bundleno = 134 (0x86), region = 32  ;;  %s1049_s7 = sand.u32 (!%p1016_p3), 1, %s866_s16  }
  0x49   : > { %s1052_s23 = sshll.u32 (!%p1016_p3), %s1049_s7, 3  ;;  %s279_s9 = scalar_lea.sflag (!%p1016_p3), [#allocation3], %s1049_s7 }
  0x4a   : > { %s282_s24 = scalar_lea.vmem (!%p1016_p3), [#allocation2], %s1052_s23 }
  0x4d   : > { %845 = dma.done.wait (%p965_p8), %s279_s9, 128  }
  0x4e   : > { %847 = vsyncadd (%p965_p8), %s279_s9, 4294967168  ;;  %s287_s2 = sand.u32 1, %s945_s21   ;;  %s597_s8 = sshll.u32 %s1049_s7, 1 }
  0x4f   : > { %s288_s26 = scalar_lea.sflag [#allocation6], %s287_s2  ;;  %s291_s25 = scalar_lea.vmem [#allocation5], %s597_s8 }
  0x50   : > { %849 = dma.done.wait (%p965_p8), %s288_s26, 64  }
  0x51   : > { %851 = vsyncadd (%p965_p8), %s288_s26, 4294967232  ;;  %v1066_v0 = vld [vmem:[%s282_s24] sm:$0xff]  ;;  %v341_v1 = vld [vmem:[%s291_s25] sm:$0x3]  ;;  %s300_s6 = scalar_lea.vmem [#allocation7], %s597_s8  ;;  %vm349_vm0 = vcmask 1041408  }
  0x52   : > { %v342_v2 = vld [vmem:[%s300_s6] sm:$0x3]  ;;  %v344_v3 = vrot.slane %v1066_v0, 6  ;;  %vm354_vm1 = vcmask 1046528   ;;  %vm360_vm2 = vcmask 1045504   ;;  %vm366_vm3 = vcmask 1044480  }
  0x53   : > { %v347_v4 = vrot.slane %v342_v2, 6  ;;  %vm372_vm4 = vcmask 1043456   ;;  %s339_s21 = scalar_lea.vmem [#allocation9], %s1052_s23  ;;  %s603_s10 = sshll.u32 %s874_s18, 7  ;;  %vm379_vm5 = vcmask 261120  }
  0x54   : > { %v350_v5 = vsel %vm349_vm0, %v341_v1, %v344_v3  ;;  %s419_s27 = sshll.u32 %s339_s21, 4  ;;  %s332_s11 = scalar_lea.vmem [#allocation8], %s1052_s23  ;;  %s1074_s27 = int_to_ptr.vmem [resolvable:$true] %s419_s27 }
  0x55   : > { %v351_v6 = vsel %vm349_vm0, %v344_v3, %v347_v4  ;;  %v355_v7 = vrot.slane %v350_v5, 1  ;;  %v361_v9 = vrot.slane %v350_v5, 2  ;;  %v367_v11 = vrot.slane %v350_v5, 3  ;;  %s404_s13 = sshll.u32 %s332_s11, 4  ;;  %s1079_s22 = scalar_lea.hbm %s1162_s4, %s603_s10  ;;  %s1081_s13 = int_to_ptr.vmem [resolvable:$true] %s404_s13 }
  0x56   : > { %v356_v8 = vrot.slane %v351_v6, 1  ;;  %v362_v10 = vrot.slane %v351_v6, 2  ;;  %v368_v12 = vrot.slane %v351_v6, 3  ;;  %v373_v15 = vrot.slane %v350_v5, 4  ;;  %s1088_s19 = scalar_lea.hbm %s1161_s3, %s603_s10  ;;  %s389_s5 = scalar_lea.sflag [#allocation10], %s1049_s7 }
  0x57   : > { %v374_v16 = vrot.slane %v351_v6, 4  ;;  %s768_s29 = scalar_lea.vmem %s1074_s27, 128  ;;  %s887_s9 = smov [#allocation9]  }
  0x58   : > { %v357_v13 = vsel %vm354_vm1, %v355_v7, %v356_v8  ;;  %v363_v14 = vsel %vm360_vm2, %v361_v9, %v362_v10  ;;  %v369_v18 = vsel %vm366_vm3, %v367_v11, %v368_v12  ;;  %p769_p8 = scmp.ne.s32.totalorder %s1074_s27, %s768_s29  ;;  %s772_s24 = sshll.u32 %s887_s9, 4  ;;  %s773_s24 = int_to_ptr.vmem [resolvable:$false] %s772_s24 }
  0x59   : > { %v359_v17 = vadd.f32 %v357_v13, %v350_v5  ;;  %v375_v20 = vsel %vm372_vm4, %v373_v15, %v374_v16  ;;  %s774_s2 = scalar_lea.vmem %s773_s24, 256  ;;  %p775_p1 = scmp.lt.s32.totalorder %s1074_s27, %s773_s24 }
  0x5a   : > { %p770_p12 = pnand %p769_p8, %p969_p9  ;;  %p776_p3 = scmp.lt.s32.totalorder %s774_s2, %s768_s29 }
  0x5b   : > { %v365_v19 = vadd.f32 %v363_v14, %v359_v17 }
  0x5c   : > { %p771_p0 = pneg %p770_p12  ;;  %p777_p2 = por %p776_p3, %p775_p1 }
  0x5d   : > { %v371_v21 = vadd.f32 %v369_v18, %v365_v19 }
  0x5e   : > { %p778_p4 = pnand %p777_p2, %p771_p0 }
  0x5f   : > { %v377_v22 = vadd.f32 %v375_v20, %v371_v21 }
  0x61   : > { %v378_v23 = vmul.f32 0.2, %v377_v22 }
  0x63   : > { %380 = vst.msk [vmem:[%s339_s21] sm:$0xff] %vm379_vm5, %v378_v23  ;;  %v381_v24 = vsub.f32 %v1066_v0, %v378_v23 }
  0x64   : > { %781 = shalt.err (!%p778_p4)
}
  0x65   : > { %s782_s8 = scalar_lea.hbm %s1079_s22, 128  ;;  %s786_s6 = scalar_lea.hbm %s1162_s4, 256 }
  0x66   : > { %p783_p5 = scmp.ne.s32.totalorder %s1079_s22, %s782_s8  ;;  %p787_p10 = scmp.lt.s32.totalorder %s1079_s22, %s1162_s4 }
  0x67   : > { %p788_p13 = scmp.lt.s32.totalorder %s786_s6, %s782_s8 }
  0x68   : > { %p784_p7 = pnand %p783_p5, %p969_p9 }
  0x69   : > { %p789_p8 = por %p788_p13, %p787_p10 }
  0x6a   : > { %p785_p6 = pneg %p784_p7 }
  0x6c   : > { %p790_p12 = pnand %p789_p8, %p785_p6 }
  0x6e   : > { %793 = shalt.err (!%p790_p12)
}
  0x6f   : > { %614 = dma.vmem_to_hbm [thread:$0]  (%p969_p9), %s1074_s27, 128, %s1079_s22, %s389_s5   ;;  %382 = vst.msk [vmem:[%s332_s11] sm:$0xff] %vm379_vm5, %v381_v24 }
  0x70   : > { %s384_s12 = scalar_lea.sflag [#allocation4], %s1049_s7  ;;  %s794_s14 = scalar_lea.vmem %s1081_s13, 128 }
  0x71   : > { %p795_p0 = scmp.ne.s32.totalorder %s1081_s13, %s794_s14  ;;  %s888_s18 = smov [#allocation8]  }
  0x72   : > { %s798_s1 = sshll.u32 %s888_s18, 4  ;;  %s799_s1 = int_to_ptr.vmem [resolvable:$false] %s798_s1 }
  0x73   : > { %p796_p1 = pnand %p795_p0, %p969_p9  ;;  %s800_s29 = scalar_lea.vmem %s799_s1, 256 }
  0x74   : > { %p801_p2 = scmp.lt.s32.totalorder %s1081_s13, %s799_s1  ;;  %p802_p4 = scmp.lt.s32.totalorder %s800_s29, %s794_s14 }
  0x75   : > { %p797_p3 = pneg %p796_p1 }
  0x76   : > { %p803_p5 = por %p802_p4, %p801_p2 }
  0x78   : > { %p804_p7 = pnand %p803_p5, %p797_p3 }
  0x7a   : > { %807 = shalt.err (!%p804_p7)
}
  0x7b   : > { %s808_s23 = scalar_lea.hbm %s1088_s19, 128  ;;  %s812_s11 = scalar_lea.hbm %s1161_s3, 256 }
  0x7c   : > { %p809_p6 = scmp.ne.s32.totalorder %s1088_s19, %s808_s23  ;;  %p813_p8 = scmp.lt.s32.totalorder %s1088_s19, %s1161_s3 }
  0x7d   : > { %p814_p12 = scmp.lt.s32.totalorder %s812_s11, %s808_s23 }
  0x7e   : > { %p810_p10 = pnand %p809_p6, %p969_p9 }
  0x7f   : > { %p815_p0 = por %p814_p12, %p813_p8 }
  0x80   : > { %p811_p13 = pneg %p810_p10 }
  0x82   : > { %p816_p1 = pnand %p815_p0, %p811_p13 }
  0x84   : > { %819 = shalt.err (!%p816_p1)
}
  0x85   : > { %613 = dma.vmem_to_hbm [thread:$0]  (%p969_p9), %s1081_s13, 128, %s1088_s19, %s384_s12  }
  0x86 PF: > { %s431_s9 = sand.u32 1, %s862_s15   ;;  %p1178_p3 = scmp.ge.s32.totalorder %s882_s20, 2 }
  0x87   : > { %s432_s24 = scalar_lea.sflag [#allocation4], %s431_s9 }
  0x88   : > { %p628_p2 = pnand %p1178_p3, %p976_p11 }
  0x8a   : > { %p629_p4 = pneg %p628_p2 }
  0x8c   : > { %853 = dma.done.wait (%p629_p4), %s432_s24, 128  }
  0x8d   : > { %855 = vsyncadd (%p629_p4), %s432_s24, 4294967168  ;;  %s441_s2 = scalar_lea.sflag [#allocation10], %s431_s9 }
  0x8e   : > { %857 = dma.done.wait (%p629_p4), %s441_s2, 128  }
  0x8f   : > { %859 = vsyncadd (%p629_p4), %s441_s2, 4294967168  ;;  %s27_s20 = sadd.s32 1, %s882_s20   ;;  %s1179_s28 = sld [smem:[#allocation17_spill]] }
  0x90   : > { %p24_p5 = scmp.ge.s32.totalorder %s27_s20, 4   ;;  %s1180_s18 = sld [smem:[#allocation15_spill]] }
  0x91   : > { %s1181_s19 = sld [smem:[#allocation16_spill]]  ;;  %s1182_s15 = smov %s866_s16 }
  0x92   : > { %s1183_s16 = smov %s870_s17  ;;  %26 = sbr.rel (!%p24_p5) target bundleno = 13 (0xd), region = 118 }
  0x95   : > { %s1184_s17 = smov %s1179_s28 }
  0x97   :  { %446 = vsyncpa [#allocation3], 1 }
  0x98   :  { %448 = vsyncpa [#allocation3 + $0x1], 1 }
  0x99   :  { %449 = vsyncpa [#allocation6], 1 }
  0x9a   :  { %451 = vsyncpa [#allocation6 + $0x1], 1 }
  0x9b   :  { %452 = vsyncpa [#allocation4], 1 }
  0x9c   :  { %454 = vsyncpa [#allocation4 + $0x1], 1 }
  0x9d   :  { %455 = vsyncpa [#allocation10], 1 }
  0x9e   :  { %457 = vsyncpa [#allocation10 + $0x1], 1 }

</bundles_post_ra>
